<compile_context>
chip_gen: v7x
topology: tpu7x:2x2x1
jax: 0.10.0
libtpu: 0.0.40
codegen_flags: <defaults>
</compile_context>

<pallas_src>
import functools

import jax
import jax.numpy as jnp
from jax.experimental import pallas as pl
from jax.experimental.pallas import tpu as pltpu

_SUBLANE = 8
_MIN_TILE = 256


def _round_up(x, m):
    return (x + m - 1) // m * m


def _make_activation(name):
    n = name.lower()
    if n == "relu":
        return lambda y: jnp.maximum(y, 0.0)
    if n == "leakyrelu":
        return lambda y: jnp.where(y >= 0.0, y, 0.2 * y)
    if n == "tanh":
        return jnp.tanh
    # MemoryEfficientSwish forward: x * sigmoid(x)
    return lambda y: y * jax.nn.sigmoid(y)


def _fusion_kernel(dv, dw, act, xf_ref, xe_ref, w_ref, b_ref, o_ref):
    # Split matmul (no lane-axis concat): y = xf @ W[:dv] + xe @ W[dv:] + b.
    # W is a single merged (Din, Dout) VMEM block; static sublane-axis ref
    # slices are free when dv is 8-aligned (true for the default config).
    y = jnp.dot(xf_ref[...], w_ref[pl.ds(0, dv), :],
                preferred_element_type=jnp.float32)
    y = y + jnp.dot(xe_ref[...], w_ref[pl.ds(dv, dw), :],
                    preferred_element_type=jnp.float32)
    y = y + b_ref[...]                     # (1, Dout) broadcast on the VPU
    o_ref[...] = act(y).astype(o_ref.dtype)   # tanh/sigmoid on EUP (free slot)


def make_fusion_layer(weight, bias, visual_dim, *, activate_fn="tanh",
                      batch_tile=2048):
    """Build a jitted forward for Fusion_Layer.

    weight: (Dv + Dw, Dout) stored so that y = x @ weight + bias.
    bias:   (Dout,)
    """
    din, dout = weight.shape
    dv = int(visual_dim)
    dw = din - dv

    # One-time parameter prep (NOT per call).
    w = jnp.asarray(weight, jnp.float32)                      # (Din, Dout)
    b2d = jnp.asarray(bias, jnp.float32).reshape(1, dout)      # (1, Dout)

    act = _make_activation(activate_fn)
    kernel = functools.partial(_fusion_kernel, dv, dw, act)

    batch_tile = max(_round_up(int(batch_tile), _SUBLANE), _MIN_TILE)
    vmem = pl.BlockSpec(memory_space=pltpu.MemorySpace.VMEM)

    def _cost(bsz):
        return pl.CostEstimate(
            flops=2 * bsz * din * dout,
            transcendentals=bsz * dout,
            bytes_accessed=4 * (bsz * (din + dout) + din * dout + dout),
        )

    def forward(x_ft, x_emb):
        bsz = x_ft.shape[0]
        out_shape = jax.ShapeDtypeStruct((bsz, dout), jnp.float32)

        if bsz >= 2 * _MIN_TILE:
            # Tiled path: stream batch tiles over a "parallel" grid axis
            # (megacore / v7x dual-TC friendly); the small weight + bias stay
            # VMEM-resident across steps.  Ragged batches are handled by a
            # masked partial last block via the cdiv grid, so they never fall
            # back to a whole-array VMEM block.
            tb = batch_tile
            # Keep >= 4 grid steps when possible so the parallel axis can
            # shard across both v7x TensorCores and still pipeline.
            while tb > _MIN_TILE and pl.cdiv(bsz, tb) < 4:
                tb = max(_round_up(tb // 2, _SUBLANE), _SUBLANE)
            out = pl.pallas_call(
                kernel,
                out_shape=out_shape,
                grid=(pl.cdiv(bsz, tb),),
                in_specs=[
                    pl.BlockSpec((tb, dv), lambda i: (i, 0)),
                    pl.BlockSpec((tb, dw), lambda i: (i, 0)),
                    pl.BlockSpec((din, dout), lambda i: (0, 0)),
                    pl.BlockSpec((1, dout), lambda i: (0, 0)),
                ],
                out_specs=pl.BlockSpec((tb, dout), lambda i: (i, 0)),
                compiler_params=pltpu.CompilerParams(
                    dimension_semantics=("parallel",)),
                cost_estimate=_cost(bsz),
            )(x_ft, x_emb, w, b2d)
        else:
            # Small batch: launch-overhead bound -> no grid / index_maps, the
            # whole problem is a single VMEM-resident block.
            out = pl.pallas_call(
                kernel,
                out_shape=out_shape,
                in_specs=[vmem] * 4,
                out_specs=vmem,
                cost_estimate=_cost(bsz),
            )(x_ft, x_emb, w, b2d)
        return out

    return jax.jit(forward)


if __name__ == "__main__":
    # Small shapes consistent with the module: batch=8, visual_dim=32,
    # word_dim=32, output_dim=64.
    B, Dv, Dw, Dout = 8, 32, 32, 64
    Din = Dv + Dw

    key = jax.random.PRNGKey(0)
    k1, k2, k3, k4, k5, k6, k7, k8 = jax.random.split(key, 8)

    x_ft = jax.random.normal(k1, (B, Dv), dtype=jnp.float32)
    x_emb = jax.random.normal(k2, (B, Dw), dtype=jnp.float32)

    # Deterministic init mimicking nn.Linear (uniform(-1/sqrt(Din), 1/sqrt(Din))).
    bound = 1.0 / (Din ** 0.5)
    weight = jax.random.uniform(k3, (Din, Dout), jnp.float32, -bound, bound)
    bias = jax.random.uniform(k4, (Dout,), jnp.float32, -bound, bound)

    fusion = make_fusion_layer(weight, bias, Dv)

    def ref_fn(a, b):
        return jnp.tanh(jnp.concatenate([a, b], axis=1) @ weight + bias)

    # 1) Small-batch (single-block, no-grid) path.
    out = jax.block_until_ready(fusion(x_ft, x_emb))
    assert out.shape == (B, Dout)
    assert jnp.allclose(out, ref_fn(x_ft, x_emb), atol=1e-5, rtol=1e-5)

    # 2) Large batch, exact tile multiple (tiled, parallel batch grid).
    Bl = 4096
    x_ft_l = jax.random.normal(k5, (Bl, Dv), dtype=jnp.float32)
    x_emb_l = jax.random.normal(k6, (Bl, Dw), dtype=jnp.float32)
    out_l = jax.block_until_ready(fusion(x_ft_l, x_emb_l))
    assert out_l.shape == (Bl, Dout)
    assert jnp.allclose(out_l, ref_fn(x_ft_l, x_emb_l), atol=1e-5, rtol=1e-5)

    # 3) Large ragged batch (partial last tile handled by the cdiv grid).
    Br = 1032
    x_ft_r = jax.random.normal(k7, (Br, Dv), dtype=jnp.float32)
    x_emb_r = jax.random.normal(k8, (Br, Dw), dtype=jnp.float32)
    out_r = jax.block_until_ready(fusion(x_ft_r, x_emb_r))
    assert out_r.shape == (Br, Dout)
    assert jnp.allclose(out_r, ref_fn(x_ft_r, x_emb_r), atol=1e-5, rtol=1e-5)

    print("KERNEL_OK")
</pallas_src>

<mosaic_0001>
module attributes {stable_mosaic.version = 11 : i64} {
  func.func @_fusion_kernel(%arg0: memref<8x32xf32, #tpu.memory_space<vmem>>, %arg1: memref<8x32xf32, #tpu.memory_space<vmem>>, %arg2: memref<64x64xf32, #tpu.memory_space<vmem>>, %arg3: memref<1x64xf32, #tpu.memory_space<vmem>>, %arg4: memref<8x64xf32, #tpu.memory_space<vmem>>) attributes {dimension_semantics = [], scalar_prefetch = 0 : i64, scratch_operands = 0 : i64, tpu.core_type = #tpu.core_type<tc>} {
    %c0 = arith.constant 0 : index
    %c0_0 = arith.constant 0 : index
    %0 = vector.load %arg0[%c0, %c0_0] : memref<8x32xf32, #tpu.memory_space<vmem>>, vector<8x32xf32>
    %c0_1 = arith.constant 0 : index
    %c0_2 = arith.constant 0 : index
    %1 = vector.load %arg2[%c0_1, %c0_2] : memref<64x64xf32, #tpu.memory_space<vmem>>, vector<32x64xf32>
    %cst = arith.constant dense<0.000000e+00> : vector<8x64xf32>
    %2 = tpu.matmul %0, %1, %cst {dimension_numbers = #tpu.dot_dimension_numbers<[1], [0], [0], [1], [0, 0, 1, 1], [], []>} : vector<8x32xf32>, vector<32x64xf32>, vector<8x64xf32> -> vector<8x64xf32>
    %c0_3 = arith.constant 0 : index
    %c0_4 = arith.constant 0 : index
    %3 = vector.load %arg1[%c0_3, %c0_4] : memref<8x32xf32, #tpu.memory_space<vmem>>, vector<8x32xf32>
    %c32 = arith.constant 32 : index
    %c0_5 = arith.constant 0 : index
    %4 = vector.load %arg2[%c32, %c0_5] : memref<64x64xf32, #tpu.memory_space<vmem>>, vector<32x64xf32>
    %cst_6 = arith.constant dense<0.000000e+00> : vector<8x64xf32>
    %5 = tpu.matmul %3, %4, %cst_6 {dimension_numbers = #tpu.dot_dimension_numbers<[1], [0], [0], [1], [0, 0, 1, 1], [], []>} : vector<8x32xf32>, vector<32x64xf32>, vector<8x64xf32> -> vector<8x64xf32>
    %6 = arith.addf %2, %5 : vector<8x64xf32>
    %c0_7 = arith.constant 0 : index
    %c0_8 = arith.constant 0 : index
    %7 = vector.load %arg3[%c0_7, %c0_8] : memref<1x64xf32, #tpu.memory_space<vmem>>, vector<1x64xf32>
    %8 = vector.broadcast %7 : vector<1x64xf32> to vector<8x64xf32>
    %9 = arith.addf %6, %8 : vector<8x64xf32>
    %10 = math.tanh %9 : vector<8x64xf32>
    %c0_9 = arith.constant 0 : index
    %c0_10 = arith.constant 0 : index
    %11 = vector.load %arg4[%c0_9, %c0_10] : memref<8x64xf32, #tpu.memory_space<vmem>>, vector<8x64xf32>
    tpu.vector_store %arg4[%c0_9, %c0_10], %10 {strides = array<i32>} : memref<8x64xf32, #tpu.memory_space<vmem>>, vector<8x64xf32>,
    return
  }
}

</mosaic_0001>

<bundles_post_ra>
// kernel: forward.1
= control target key start
LH: loop header
LB: loop body
LE: loop exit
PB: predicated region body
PF: predicated region fallthrough
CT: control target
= control target key end

     0   :  { %9 = vsyncpa [#allocation3], 0  ;;  %s476_s0 = inlined_call_operand.hbm [shape: f32[8,32], index: 0, kind: input, shape index: {}]   ;;  %s477_s1 = inlined_call_operand.hbm [shape: f32[8,32], index: 1, kind: input, shape index: {}]   ;;  %s478_s2 = inlined_call_operand.hbm [shape: f32[64,64], index: 2, kind: input, shape index: {}]   ;;  %s479_s3 = inlined_call_operand.vmem [shape: f32[1,64], index: 3, kind: input, shape index: {}]   ;;  %s480_s4 = inlined_call_operand.hbm [shape: f32[8,64], index: 4, kind: output, shape index: {}]  }
   0x1   :  { %10 = vsyncpa [#allocation6], 0 }
   0x2   :  { %11 = vsyncpa [#allocation4], 0  ;;  %s391_s15 = smov [#allocation5]   ;;  %s392_s17 = smov [#allocation2]  }
   0x3   :  { %s28_s16 = sshll.u32 %s391_s15, 4  ;;  %s18_s18 = sshll.u32 %s392_s17, 4  ;;  %s29_s16 = int_to_ptr.vmem [resolvable:$true] %s28_s16  ;;  %s19_s18 = int_to_ptr.vmem [resolvable:$true] %s18_s18 }
   0x4   :  { %s297_s21 = scalar_lea.hbm %s477_s1, 128 }
   0x5   :  { %p298_p0 = scmp.ne.s32.totalorder %s477_s1, %s297_s21  ;;  %p301_p1 = scmp.lt.u32.totalorder %s297_s21, %s477_s1 }
   0x7   :  { %p303_p2 = pnand %p301_p1, %p298_p0 }
   0x9   :  { %306 = shalt.err (!%p303_p2)
}
   0xa   :  { %s307_s26 = scalar_lea.vmem %s29_s16, 128  ;;  %p312_p4 = scmp.lt.s32.totalorder %s29_s16, %s29_s16 }
   0xb   :  { %p308_p3 = scmp.ne.s32.totalorder %s29_s16, %s307_s26  ;;  %p313_p5 = scmp.lt.s32.totalorder %s307_s26, %s307_s26 }
   0xd   :  { %p314_p6 = por %p313_p5, %p312_p4 }
   0xf   :  { %p315_p7 = pnand %p314_p6, %p308_p3 }
  0x11   :  { %318 = shalt.err (!%p315_p7)
}
  0x12   :  { %31 = dma.hbm_to_vmem [thread:$0]  %s477_s1, 128, %s29_s16, [#allocation6]  }
  0x13   :  { %s319_s5 = scalar_lea.hbm %s476_s0, 128 }
  0x14   :  { %p320_p8 = scmp.ne.s32.totalorder %s476_s0, %s319_s5  ;;  %p323_p9 = scmp.lt.u32.totalorder %s319_s5, %s476_s0 }
  0x16   :  { %p325_p10 = pnand %p323_p9, %p320_p8 }
  0x18   :  { %328 = shalt.err (!%p325_p10)
}
  0x19   :  { %s329_s10 = scalar_lea.vmem %s19_s18, 128  ;;  %p334_p12 = scmp.lt.s32.totalorder %s19_s18, %s19_s18 }
  0x1a   :  { %p330_p11 = scmp.ne.s32.totalorder %s19_s18, %s329_s10  ;;  %p335_p13 = scmp.lt.s32.totalorder %s329_s10, %s329_s10 }
  0x1c   :  { %p336_p0 = por %p335_p13, %p334_p12 }
  0x1e   :  { %p337_p1 = pnand %p336_p0, %p330_p11 }
  0x20   :  { %340 = shalt.err (!%p337_p1)
}
  0x21   :  { %21 = dma.hbm_to_vmem [thread:$0]  %s476_s0, 128, %s19_s18, [#allocation3]  }
  0x22   :  { %s393_s12 = smov [#allocation7]   ;;  %s341_s16 = scalar_lea.hbm %s478_s2, 1024 }
  0x23   :  { %s37_s13 = sshll.u32 %s393_s12, 4  ;;  %p342_p2 = scmp.ne.s32.totalorder %s478_s2, %s341_s16  ;;  %s38_s13 = int_to_ptr.vmem [resolvable:$true] %s37_s13 }
  0x24   :  { %p345_p3 = scmp.lt.u32.totalorder %s341_s16, %s478_s2 }
  0x26   :  { %p347_p4 = pnand %p345_p3, %p342_p2 }
  0x28   :  { %350 = shalt.err (!%p347_p4)
}
  0x29   :  { %s351_s22 = scalar_lea.vmem %s38_s13, 1024  ;;  %p356_p6 = scmp.lt.s32.totalorder %s38_s13, %s38_s13 }
  0x2a   :  { %p352_p5 = scmp.ne.s32.totalorder %s38_s13, %s351_s22  ;;  %p357_p7 = scmp.lt.s32.totalorder %s351_s22, %s351_s22 }
  0x2c   :  { %p358_p8 = por %p357_p7, %p356_p6 }
  0x2e   :  { %p359_p9 = pnand %p358_p8, %p352_p5 }
  0x30   :  { %362 = shalt.err (!%p359_p9)
}
  0x31   :  { %s394_s0 = smov 128   ;;  %s395_s18 = smov 8  }
  0x32   :  { %43 = dma.hbm_to_vmem [thread:$0]  %s478_s2, 1024, %s38_s13, [#allocation6], %s394_s0, %s394_s0, %s395_s18  }
  0x33   :  { %385 = dma.done.wait [#allocation3], 128  }
  0x34   :  { %386 = vsyncadd [#allocation3], 4294967168 }
  0x35   :  { %387 = dma.done.wait [#allocation6], 1152  }
  0x36   :  { %388 = vsyncadd [#allocation6], 4294966144  ;;  %v396_v0 = vmov 0.0|0.0   ;;  %vm397_vm0 = vmmov 0   ;;  %v398_v1 = vmov 0.0   ;;  %v61_v2 = vld [vmem:[#allocation7 + $0x20] sm:$0xff] }
  0x37   :  { %274 = vmatprep.subr.bf16.mxu0 %v396_v0  ;;  %280 = vmatprep.subr.bf16.mxu1 %v396_v0  ;;  %v62_v3 = vld [vmem:[#allocation7 + $0x28] sm:$0xff]  ;;  %v56_v4 = vld [vmem:[#allocation7] sm:$0xff]  ;;  %v63_v7 = vld [vmem:[#allocation7 + $0x30] sm:$0xff]  ;;  %vm65_vm1 = vcmask 261120   ;;  %s399_s26 = smov [#allocation8]   ;;  %vm221_vm2 = vcmask 523264  }
  0x38   :  { %260 = vmatprep.mubr.msk.f32.mxu0 %vm397_vm0, %v398_v1  ;;  %271 = vmatprep.mubr.msk.f32.mxu1 %vm397_vm0, %v398_v1  ;;  %v275_v5 = vpack.c.bf16 %v62_v3, %v61_v2  ;;  %v57_v6 = vld [vmem:[#allocation7 + $0x8] sm:$0xff]  ;;  %v64_v8 = vld [vmem:[#allocation7 + $0x38] sm:$0xff]  ;;  %v58_v10 = vld [vmem:[#allocation7 + $0x10] sm:$0xff]  ;;  %s229_s27 = sshll.u32 %s399_s26, 4  ;;  %s230_s27 = int_to_ptr.vmem [resolvable:$true] %s229_s27 }
  0x39   :  { %v281_v9 = vpack.c.bf16 %v57_v6, %v56_v4  ;;  %v59_v11 = vld [vmem:[#allocation7 + $0x18] sm:$0xff]  ;;  %v278_v12 = vpack.c.bf16 %v64_v8, %v63_v7  ;;  %v55_v15 = vld [vmem:[#allocation2] sm:$0xff]  ;;  %s363_s28 = scalar_lea.vmem %s230_s27, 128  ;;  %p368_p11 = scmp.lt.s32.totalorder %s230_s27, %s230_s27 }
  0x3a   :  { %276 = vmatpush3.bf16.msra.mxu0 %v275_v5  ;;  %v284_v13 = vpack.c.bf16 %v59_v11, %v58_v10  ;;  %v60_v14 = vld [vmem:[#allocation5] sm:$0xff]  ;;  %v241_v18 = vld [vmem:[%s479_s3] ss:$0 sm:$0xff]  ;;  %p364_p10 = scmp.ne.s32.totalorder %s230_s27, %s363_s28  ;;  %p369_p12 = scmp.lt.s32.totalorder %s363_s28, %s363_s28 }
  0x3b   :  { %282 = vmatpush3.bf16.msra.mxu1 %v281_v9  ;;  %277 = vmatprep.subr.bf16.mxu0 %v396_v0 }
  0x3c   :  { %283 = vmatprep.subr.bf16.mxu1 %v396_v0  ;;  %p370_p13 = por %p369_p12, %p368_p11 }
  0x3e   :  { %279 = vmatpush3.bf16.msra.mxu0 %v278_v12  ;;  %p371_p0 = pnand %p370_p13, %p364_p10 }
  0x3f   :  { %285 = vmatpush3.bf16.msra.mxu1 %v284_v13 }
  0x41   :  { %261 = vmatmul.mubr.msk.f32.vlgmr.msra.gmra.mrb[0].mxu0 %vm65_vm1, %v60_v14 }
  0x42   :  { %272 = vmatmul.mubr.msk.f32.vlgmr.msra.gmra.mrb[0].mxu1 %vm65_vm1, %v55_v15 }
 0x114   :  { %v135_v16 = vpop.f32.mrb[0].mxu0 }
 0x115   :  { %v208_v17 = vpop.f32.mrb[0].mxu1  ;;  %v262_v19 = vpop.f32.mrb[1].mxu0 }
 0x116   :  { %v209_v20 = vadd.f32 %v208_v17, %v135_v16  ;;  %v273_v21 = vpop.f32.mrb[1].mxu1 }
 0x118   :  { %v219_v22 = vadd.f32 %v241_v18, %v209_v20 }
 0x11a   :  { %295 = vtanh.f32 %v219_v22 }
 0x124   :  { %v296_v23 = vpop.eup %295 }
 0x125   :  { %222 = vst.msk [vmem:[#allocation8] sm:$0xff] %vm221_vm2, %v296_v23 }
 0x126   :  { %374 = shalt.err (!%p371_p0)
}
 0x127   :  { %s375_s30 = scalar_lea.hbm %s480_s4, 128 }
 0x128   :  { %p376_p1 = scmp.ne.s32.totalorder %s480_s4, %s375_s30  ;;  %p379_p2 = scmp.lt.u32.totalorder %s375_s30, %s480_s4 }
 0x12a   :  { %p381_p3 = pnand %p379_p2, %p376_p1 }
 0x12c   :  { %384 = shalt.err (!%p381_p3)
}
 0x12d   :  { %232 = dma.vmem_to_hbm [thread:$0]  %s230_s27, 128, %s480_s4, [#allocation4]  }
 0x12e   :  { %389 = dma.done.wait [#allocation4], 128  }
 0x12f   :  { %390 = vsyncadd [#allocation4], 4294967168 }
 0x130   :  { %236 = vsyncpa [#allocation3], 1 }
 0x131   :  { %237 = vsyncpa [#allocation6], 1 }
 0x132   :  { %238 = vsyncpa [#allocation4], 1 }

</bundles_post_ra>
